<compile_context>
chip_gen: v7x
topology: tpu7x:2x2x1
jax: 0.10.0
libtpu: 0.0.40
codegen_flags: <defaults>
</compile_context>

<pallas_src>
import functools

import jax
import jax.numpy as jnp
from jax.experimental import pallas as pl
from jax.experimental.pallas import tpu as pltpu


_TM_MAX = 256                 # trial-tile cap (sublane axis), multiple of 8
_TD_MAX = 4096                # feature-tile cap (lane axis), multiple of 128
_OUT_LANES = 128              # lane-dense output slab width
_VMEM_LIMIT = 32 * 1024 * 1024  # safe on v5e/v6e/v7x, plenty for 2x4 MiB X bufs


def _cdiv(a, b):
    return -(-a // b)


def _round_up(x, m):
    return _cdiv(x, m) * m


def _pick_tiling(n, max_tile, align):
    """Pad `n` to `align`, then split into the fewest near-equal tiles of size
    <= max_tile (each a multiple of `align`).  Avoids the round-up-to-max-tile
    padding blow-up (e.g. D=2176 stays 2176/2304 instead of 4096)."""
    n_pad = _round_up(max(n, 1), align)
    n_tiles = _cdiv(n_pad, max_tile)
    tile = _round_up(_cdiv(n_pad, n_tiles), align)
    n_pad = _round_up(n_pad, tile)
    return n_pad, tile


def _full_rank_kernel(icpt_ref, x_ref, beta_ref, o_ref, acc_ref):
    """One (trial-tile i, task t, feature-tile k) grid step.

    icpt_ref : (n_tasks,)       SMEM  scalar-prefetched intercepts
    x_ref    : (TM, TD)         VMEM  X tile (native dtype)
    beta_ref : (NK, TD)         VMEM  whole per-task Beta, resident across i,k
    o_ref    : (TM, OUT_LANES)  VMEM  lane-dense output slab
    acc_ref  : (TM, 128)        VMEM  lane-parallel f32 accumulator
    """
    # Grid/program queries only at top level (not inside pl.when bodies).
    t = pl.program_id(1)
    k = pl.program_id(2)
    n_k = pl.num_programs(2)
    intercept = icpt_ref[t]                       # scalar SMEM read

    @pl.when(k == 0)
    def _init():
        acc_ref[...] = jnp.zeros_like(acc_ref)

    tm, td = x_ref.shape
    # Lane-parallel accumulation over 128-wide chunks: pure VPU mul/add, no
    # cross-lane work in the streaming loop.
    acc = acc_ref[...]                            # (TM, 128) f32
    for c in range(td // 128):
        sl = slice(c * 128, (c + 1) * 128)
        xc = x_ref[:, sl].astype(jnp.float32)                 # (TM, 128)
        bc = beta_ref[pl.ds(k, 1), sl].astype(jnp.float32)    # (1, 128)
        acc = acc + xc * bc
    acc_ref[...] = acc

    @pl.when(k == n_k - 1)
    def _finalize():
        # Single 128 -> 1 cross-lane reduce per (trial-tile, task).
        s = jnp.sum(acc_ref[...], axis=1, keepdims=True) + intercept  # (TM, 1)
        sig = jax.nn.sigmoid(s)
        o_ref[...] = jnp.broadcast_to(sig, o_ref.shape).astype(o_ref.dtype)


@functools.partial(jax.jit, static_argnames=("tm", "td"))
def _fused_forward(intercepts, x_stacked, beta_stacked, *, tm, td):
    n_tasks, n_trials_pad, d_pad = x_stacked.shape
    n_k = beta_stacked.shape[1]
    n_i = n_trials_pad // tm
    # Trial tiles lead (usually the larger parallel axis -> better megacore
    # balance on v7x); the reduction axis is last / "arbitrary".
    grid = (n_i, n_tasks, n_k)

    cost = pl.CostEstimate(
        flops=2 * n_tasks * n_trials_pad * d_pad,
        transcendentals=n_tasks * n_trials_pad,
        bytes_accessed=(x_stacked.size * x_stacked.dtype.itemsize
                        + n_i * beta_stacked.size * beta_stacked.dtype.itemsize
                        + n_tasks * n_trials_pad * _OUT_LANES * 4),
    )

    return pl.pallas_call(
        _full_rank_kernel,
        out_shape=jax.ShapeDtypeStruct(
            (n_tasks, n_trials_pad, _OUT_LANES), jnp.float32),
        grid_spec=pltpu.PrefetchScalarGridSpec(
            num_scalar_prefetch=1,          # intercepts -> SMEM before the grid
            grid=grid,
            in_specs=[
                # X: (task, trial-tile, feature-tile); task axis squeezed.
                pl.BlockSpec((None, tm, td), lambda i, t, k, icpt: (t, i, k)),
                # Beta: whole task's coefficients, resident across i and k.
                pl.BlockSpec((None, n_k, td), lambda i, t, k, icpt: (t, 0, 0)),
            ],
            out_specs=pl.BlockSpec((None, tm, _OUT_LANES),
                                   lambda i, t, k, icpt: (t, i, 0)),
            scratch_shapes=[pltpu.VMEM((tm, 128), jnp.float32)],
        ),
        compiler_params=pltpu.CompilerParams(
            dimension_semantics=("parallel", "parallel", "arbitrary"),
            vmem_limit_bytes=_VMEM_LIMIT),
        cost_estimate=cost,
    )(intercepts, x_stacked, beta_stacked)


class MultiTaskFullRankModelPallas:
    """JAX/Pallas port of Multi_Task_Full_Rank_Model (forward only)."""

    def __init__(self, n_tasks, n_units, n_t_bins, half_window_size,
                 soft_loss_penalty=0.1, key=None):
        self.n_tasks = n_tasks
        self.n_units = n_units
        self.n_t_bins = n_t_bins
        self.half_window_size = half_window_size
        self.window_size = 2 * half_window_size + 1
        self.soft_loss_penalty = soft_loss_penalty

        if key is None:
            key = jax.random.PRNGKey(0)
        keys = jax.random.split(key, 2 * n_tasks)
        self.Betas = [
            jax.random.normal(keys[2 * i],
                              (n_units[i], n_t_bins, self.window_size),
                              dtype=jnp.float32)
            for i in range(n_tasks)
        ]
        self.intercepts = [
            jax.random.normal(keys[2 * i + 1], (1,), dtype=jnp.float32)
            for i in range(n_tasks)
        ]

    def forward(self, X_lst):
        n_tasks = self.n_tasks
        # Flatten (units, t_bins, window) -> feature axis D per task.
        x2d_lst = [X_lst[t].reshape(X_lst[t].shape[0], -1)
                   for t in range(n_tasks)]
        trials = [x.shape[0] for x in x2d_lst]
        d_dims = [x.shape[1] for x in x2d_lst]

        # Near-equal tile splits: lane-align D (128), sublane-align trials (8),
        # minimal padding to a whole number of tiles.
        d_pad, td = _pick_tiling(max(d_dims), _TD_MAX, 128)
        n_trials_pad, tm = _pick_tiling(max(trials), _TM_MAX, 8)
        n_k = d_pad // td

        # Keep X in its native dtype in HBM (kernel upcasts per chunk).
        # TODO(synk): pass bf16/int8 X where the data tolerates it for
        # 2-4x less HBM traffic; and group very heterogeneous tasks into
        # separate fused calls instead of padding to the global max.
        x_dtype = jnp.result_type(*[x.dtype for x in x2d_lst])
        x_stacked = jnp.stack([
            jnp.pad(x, ((0, n_trials_pad - x.shape[0]),
                        (0, d_pad - x.shape[1]))).astype(x_dtype)
            for x in x2d_lst])
        beta_stacked = jnp.stack([
            jnp.pad(self.Betas[t].reshape(-1), (0, d_pad - d_dims[t]))
            for t in range(n_tasks)
        ]).astype(jnp.float32).reshape(n_tasks, n_k, td)
        intercepts = jnp.concatenate(self.intercepts).astype(jnp.float32)

        out = _fused_forward(intercepts, x_stacked, beta_stacked, tm=tm, td=td)
        out_lst = [out[t, :trials[t], 0] for t in range(n_tasks)]
        return out_lst, self.Betas

    # TODO(synk): soft_loss (Frobenius-norm soft-sharing regularizer) is a
    # training-time loss, not part of forward(); left un-kernelized.


def _reference_forward(model, X_lst):
    outs = []
    for task_idx in range(model.n_tasks):
        X = X_lst[task_idx]
        s = jnp.einsum('ctd,kctd->k', model.Betas[task_idx], X)
        s = s + model.intercepts[task_idx][0]
        outs.append(jax.nn.sigmoid(s))
    return outs


if __name__ == "__main__":
    key = jax.random.PRNGKey(0)
    n_tasks = 2
    n_units = [4, 6]
    n_t_bins = 8
    half_window_size = 3
    window_size = 2 * half_window_size + 1
    n_trials = [8, 12]          # different trial counts per task

    k_model, k_x0, k_x1 = jax.random.split(key, 3)
    model = MultiTaskFullRankModelPallas(
        n_tasks, n_units, n_t_bins, half_window_size, key=k_model)

    X_lst = [
        jax.random.normal(
            k_x0, (n_trials[0], n_units[0], n_t_bins, window_size),
            dtype=jnp.float32),
        jax.random.normal(
            k_x1, (n_trials[1], n_units[1], n_t_bins, window_size),
            dtype=jnp.float32),
    ]

    out_lst, betas = model.forward(X_lst)
    out_lst = [jax.block_until_ready(o) for o in out_lst]

    ref_lst = _reference_forward(model, X_lst)
    for o, r in zip(out_lst, ref_lst):
        assert o.shape == r.shape
        assert jnp.allclose(o, r, atol=1e-5, rtol=1e-5)

    print("KERNEL_OK")
</pallas_src>

<mosaic_0001>
module attributes {stable_mosaic.version = 11 : i64} {
  func.func @_full_rank_kernel(%arg0: i32, %arg1: i32, %arg2: i32, %arg3: memref<2xf32, #tpu.memory_space<smem>>, %arg4: memref<1x16x384xf32, #tpu.memory_space<vmem>>, %arg5: memref<1x1x384xf32, #tpu.memory_space<vmem>>, %arg6: memref<1x16x128xf32, #tpu.memory_space<vmem>>, %arg7: memref<16x128xf32, #tpu.memory_space<vmem>>) attributes {dimension_semantics = [#tpu.dimension_semantics<parallel>, #tpu.dimension_semantics<parallel>, #tpu.dimension_semantics<arbitrary>], iteration_bounds = array<i64: 1, 2, 1>, scalar_prefetch = 1 : i64, scratch_operands = 1 : i64, tpu.core_type = #tpu.core_type<tc>, window_params = [{transform_indices = @transform_0, window_bounds = array<i64: 1, 16, 384>}, {transform_indices = @transform_1, window_bounds = array<i64: 1, 1, 384>}, {transform_indices = @transform_2, window_bounds = array<i64: 1, 16, 128>}]} {
    %0 = arith.index_cast %arg1 : i32 to index
    %1 = memref.load %arg3[%0] : memref<2xf32, #tpu.memory_space<smem>>
    %c0_i32 = arith.constant 0 : i32
    %2 = arith.cmpi eq, %arg2, %c0_i32 : i32
    %3 = arith.extui %2 : i1 to i32
    %c0_i32_0 = arith.constant 0 : i32
    %4 = arith.cmpi ne, %3, %c0_i32_0 : i32
    scf.if %4 {
      %cst = arith.constant 0.000000e+00 : f32
      %34 = vector.broadcast %cst : f32 to vector<16x128xf32>
      %c0_19 = arith.constant 0 : index
      %c0_20 = arith.constant 0 : index
      %35 = vector.load %arg7[%c0_19, %c0_20] : memref<16x128xf32, #tpu.memory_space<vmem>>, vector<16x128xf32>
      tpu.vector_store %arg7[%c0_19, %c0_20], %34 {strides = array<i32>} : memref<16x128xf32, #tpu.memory_space<vmem>>, vector<16x128xf32>,
    } else {
    }
    %c0 = arith.constant 0 : index
    %c0_1 = arith.constant 0 : index
    %5 = vector.load %arg7[%c0, %c0_1] : memref<16x128xf32, #tpu.memory_space<vmem>>, vector<16x128xf32>
    %c0_2 = arith.constant 0 : index
    %c0_3 = arith.constant 0 : index
    %c0_4 = arith.constant 0 : index
    %6 = vector.load %arg4[%c0_2, %c0_3, %c0_4] : memref<1x16x384xf32, #tpu.memory_space<vmem>>, vector<1x16x128xf32>
    %7 = vector.shape_cast %6 : vector<1x16x128xf32> to vector<16x128xf32>
    %c0_5 = arith.constant 0 : index
    %8 = arith.index_cast %arg2 : i32 to index
    %c0_6 = arith.constant 0 : index
    %9 = vector.load %arg5[%c0_5, %8, %c0_6] : memref<1x1x384xf32, #tpu.memory_space<vmem>>, vector<1x1x128xf32>
    %10 = vector.shape_cast %9 : vector<1x1x128xf32> to vector<1x128xf32>
    %11 = vector.broadcast %10 : vector<1x128xf32> to vector<16x128xf32>
    %12 = arith.mulf %7, %11 : vector<16x128xf32>
    %13 = arith.addf %5, %12 : vector<16x128xf32>
    %c0_7 = arith.constant 0 : index
    %c0_8 = arith.constant 0 : index
    %c128 = arith.constant 128 : index
    %14 = vector.load %arg4[%c0_7, %c0_8, %c128] : memref<1x16x384xf32, #tpu.memory_space<vmem>>, vector<1x16x128xf32>
    %15 = vector.shape_cast %14 : vector<1x16x128xf32> to vector<16x128xf32>
    %c0_9 = arith.constant 0 : index
    %16 = arith.index_cast %arg2 : i32 to index
    %c128_10 = arith.constant 128 : index
    %17 = vector.load %arg5[%c0_9, %16, %c128_10] : memref<1x1x384xf32, #tpu.memory_space<vmem>>, vector<1x1x128xf32>
    %18 = vector.shape_cast %17 : vector<1x1x128xf32> to vector<1x128xf32>
    %19 = vector.broadcast %18 : vector<1x128xf32> to vector<16x128xf32>
    %20 = arith.mulf %15, %19 : vector<16x128xf32>
    %21 = arith.addf %13, %20 : vector<16x128xf32>
    %c0_11 = arith.constant 0 : index
    %c0_12 = arith.constant 0 : index
    %c256 = arith.constant 256 : index
    %22 = vector.load %arg4[%c0_11, %c0_12, %c256] : memref<1x16x384xf32, #tpu.memory_space<vmem>>, vector<1x16x128xf32>
    %23 = vector.shape_cast %22 : vector<1x16x128xf32> to vector<16x128xf32>
    %c0_13 = arith.constant 0 : index
    %24 = arith.index_cast %arg2 : i32 to index
    %c256_14 = arith.constant 256 : index
    %25 = vector.load %arg5[%c0_13, %24, %c256_14] : memref<1x1x384xf32, #tpu.memory_space<vmem>>, vector<1x1x128xf32>
    %26 = vector.shape_cast %25 : vector<1x1x128xf32> to vector<1x128xf32>
    %27 = vector.broadcast %26 : vector<1x128xf32> to vector<16x128xf32>
    %28 = arith.mulf %23, %27 : vector<16x128xf32>
    %29 = arith.addf %21, %28 : vector<16x128xf32>
    %c0_15 = arith.constant 0 : index
    %c0_16 = arith.constant 0 : index
    %30 = vector.load %arg7[%c0_15, %c0_16] : memref<16x128xf32, #tpu.memory_space<vmem>>, vector<16x128xf32>
    tpu.vector_store %arg7[%c0_15, %c0_16], %29 {strides = array<i32>} : memref<16x128xf32, #tpu.memory_space<vmem>>, vector<16x128xf32>,
    %c0_i32_17 = arith.constant 0 : i32
    %31 = arith.cmpi eq, %arg2, %c0_i32_17 : i32
    %32 = arith.extui %31 : i1 to i32
    %c0_i32_18 = arith.constant 0 : i32
    %33 = arith.cmpi ne, %32, %c0_i32_18 : i32
    scf.if %33 {
      %c0_19 = arith.constant 0 : index
      %c0_20 = arith.constant 0 : index
      %34 = vector.load %arg7[%c0_19, %c0_20] : memref<16x128xf32, #tpu.memory_space<vmem>>, vector<16x128xf32>
      %cst = arith.constant dense<0.000000e+00> : vector<16xf32>
      %35 = vector.multi_reduction <add>, %34, %cst [1] : vector<16x128xf32> to vector<16xf32>
      %36 = vector.shape_cast %35 : vector<16xf32> to vector<16x1xf32>
      %37 = vector.broadcast %1 : f32 to vector<16x1xf32>
      %38 = arith.addf %36, %37 : vector<16x1xf32>
      %39 = arith.negf %38 : vector<16x1xf32>
      %40 = math.exp %39 : vector<16x1xf32>
      %cst_21 = arith.constant 1.000000e+00 : f32
      %41 = vector.broadcast %cst_21 : f32 to vector<16x1xf32>
      %42 = arith.addf %41, %40 : vector<16x1xf32>
      %43 = arith.divf %41, %42 : vector<16x1xf32>
      %44 = vector.shape_cast %43 : vector<16x1xf32> to vector<16x1xf32>
      %45 = vector.broadcast %44 : vector<16x1xf32> to vector<16x128xf32>
      %c0_22 = arith.constant 0 : index
      %c0_23 = arith.constant 0 : index
      %c0_24 = arith.constant 0 : index
      %46 = vector.load %arg6[%c0_22, %c0_23, %c0_24] : memref<1x16x128xf32, #tpu.memory_space<vmem>>, vector<1x16x128xf32>
      %47 = vector.shape_cast %46 : vector<1x16x128xf32> to vector<16x128xf32>
      %48 = vector.shape_cast %45 : vector<16x128xf32> to vector<1x16x128xf32>
      tpu.vector_store %arg6[%c0_22, %c0_23, %c0_24], %48 {strides = array<i32>} : memref<1x16x128xf32, #tpu.memory_space<vmem>>, vector<1x16x128xf32>,
    } else {
    }
    return
  }
  func.func @transform_0(%arg0: i32, %arg1: i32, %arg2: i32, %arg3: memref<2xf32, #tpu.memory_space<smem>>) -> (i32, i32, i32) {
    %c0_i32 = arith.constant 0 : i32
    return %arg1, %arg0, %arg2 : i32, i32, i32
  }
  func.func @transform_1(%arg0: i32, %arg1: i32, %arg2: i32, %arg3: memref<2xf32, #tpu.memory_space<smem>>) -> (i32, i32, i32) {
    %c0_i32 = arith.constant 0 : i32
    %c0_i32_0 = arith.constant 0 : i32
    %c0_i32_1 = arith.constant 0 : i32
    return %arg1, %c0_i32, %c0_i32_0 : i32, i32, i32
  }
  func.func @transform_2(%arg0: i32, %arg1: i32, %arg2: i32, %arg3: memref<2xf32, #tpu.memory_space<smem>>) -> (i32, i32, i32) {
    %c0_i32 = arith.constant 0 : i32
    %c0_i32_0 = arith.constant 0 : i32
    return %arg1, %arg0, %c0_i32 : i32, i32, i32
  }
}

</mosaic_0001>

<bundles_post_ra>
// kernel: _fused_forward.1
= control target key start
LH: loop header
LB: loop body
LE: loop exit
PB: predicated region body
PF: predicated region fallthrough
CT: control target
= control target key end

     0   :  { %s861_s0 = inlined_call_operand.hbm [shape: f32[2], index: 0, kind: input, shape index: {}]   ;;  %s862_s1 = inlined_call_operand.hbm [shape: f32[2,16,384], index: 1, kind: input, shape index: {}]   ;;  %s863_s2 = inlined_call_operand.vmem [shape: f32[2,1,384], index: 2, kind: input, shape index: {}]   ;;  %s864_s3 = inlined_call_operand.hbm [shape: f32[2,16,128], index: 3, kind: output, shape index: {}]  }
   0x1   :  { %s514_s14 = scalar_lea.hbm %s861_s0, 16 }
   0x2   :  { %p515_p0 = scmp.ne.s32.totalorder %s861_s0, %s514_s14  ;;  %p518_p1 = scmp.lt.u32.totalorder %s514_s14, %s861_s0 }
   0x4   :  { %p520_p2 = pnand %p518_p1, %p515_p0 }
   0x6   :  { %523 = shalt.err (!%p520_p2)  }
   0x7   :  { %s640_s19 = smov [#allocation4]  }
   0x8   :  { %9 = dma.hbm_to_smem %s861_s0, 16, %s640_s19, [#allocation3] }
   0x9   :  { %606 = dma.done.wait [#allocation3], 16 }
   0xa   :  { %607 = vsyncadd [#allocation3], 4294967280 }
   0xb   :  { %11 = sfence }
   0xc   :  { %12 = vsyncpa [#allocation6], 0 }
   0xd   :  { %14 = vsyncpa [#allocation6 + $0x1], 0 }
   0xe   :  { %15 = vsyncpa [#allocation7], 0 }
   0xf   :  { %17 = vsyncpa [#allocation7 + $0x1], 0  ;;  %s679_s22 = smov 0   ;;  %s681_s23 = smov 0  }
  0x10   :  { %s683_s24 = smov 0   ;;  %s685_s25 = smov 0  }
  0x11   :  { %s687_s26 = smov 0   ;;  %s689_s27 = smov 0  }
  0x12 LB: > { %s417_s0 = sadd.s32 4294967295, %s638_s27   ;;  %s418_s28 = sadd.s32 4294967294, %s638_s27   ;;  %s638_s27 = sphi %s689_s27, %s23_s27   ;;  %s634_s26 = sphi %s687_s26, %s879_s26   ;;  %s630_s25 = sphi %s685_s25, %s878_s25   ;;  %s626_s24 = sphi %s683_s24, %s877_s24   ;;  %s622_s23 = sphi %s681_s23, %s876_s23   ;;  %s618_s22 = sphi %s679_s22, %s875_s22  }
  0x13   : > { %s38_s29 = sadd.s32 1, %s634_s26  ;;  %s53_s30 = sadd.s32 1, %s626_s24 }
  0x14   : > { %p40_p3 = scmp.ge.s32.totalorder %s38_s29, 2  ;;  %p60_p4 = scmp.ne.s32.totalorder %s626_s24, %s622_s23 }
  0x15   : > { %p61_p5 = scmp.eq.s32.totalorder %s638_s27, 0  ;;  %p66_p6 = scmp.ne.s32.totalorder %s622_s23, %s618_s22 }
  0x16   : > { %s881_s29 = smov (%p40_p3, %s38_s29), 0  ;;  %p67_p8 = scmp.eq.s32.totalorder %s417_s0, 0 }
  0x17   : > { %p720_p7 = por %p61_p5, %p60_p4  ;;  %s46_s5 = ssub.s32 %s634_s26, %s881_s29 }
  0x18   : > { %p118_p9 = scmp.eq.s32.totalorder %s417_s0, 1  ;;  %p51_p10 = scmp.eq.s32.totalorder %s46_s5, 0 }
  0x19   : > { %p726_p11 = por %p67_p8, %p66_p6  ;;  %p124_p13 = scmp.eq.s32.totalorder %s418_s28, 1 }
  0x1a   : > { %p730_p12 = por %p118_p9, %p60_p4  ;;  %p451_p2 = scmp.lt.s32.totalorder %s638_s27, 2 }
  0x1b   : > { %s735_s8 = scalar_select %p51_p10, %s626_s24, %s53_s30  }
  0x1c   : > { %s868_s7 = scalar_select %p730_p12, 1, 0 }
  0x1d   : > { %p737_p0 = por %p124_p13, %p66_p6  ;;  %s144_s10 = sand.u32 1, %s626_s24  }
  0x1e   : > { %s435_s11 = smul.u32 48, %s144_s10  ;;  %p747_p3 = pnand %p451_p2, %p720_p7 }
  0x1f   : > { %s869_s9 = scalar_select %p737_p0, 1, 0 }
  0x20   : > { %s436_s12 = smul.u32 768, %s634_s26  ;;  %s148_s17 = scalar_lea.vmem [#allocation5], %s435_s11 }
  0x21   : > { %s160_s18 = sshll.u32 %s148_s17, 4  ;;  %s759_s19 = scalar_lea.sflag [#allocation6], %s144_s10  ;;  %s756_s18 = int_to_ptr.vmem [resolvable:$true] %s160_s18 }
  0x22   : > { %s754_s16 = scalar_lea.hbm %s862_s1, %s436_s12  ;;  %p526_p6 = pneg %p747_p3 }
  0x23   : > { %s524_s20 = scalar_lea.hbm %s754_s16, 768  ;;  %s529_s28 = scalar_lea.hbm %s862_s1, 1536 }
  0x24   : > { %p525_p5 = scmp.ne.s32.totalorder %s754_s16, %s524_s20  ;;  %p530_p9 = scmp.lt.u32.totalorder %s754_s16, %s862_s1 }
  0x25   : > { %p531_p10 = scmp.lt.u32.totalorder %s529_s28, %s524_s20  ;;  %p533_p2 = scmp.lt.u32.totalorder %s524_s20, %s754_s16 }
  0x26   : > { %p527_p7 = pnand %p526_p6, %p525_p5 }
  0x27   : > { %p532_p13 = por %p531_p10, %p530_p9 }
  0x28   : > { %p528_p8 = pneg %p527_p7 }
  0x29   : > { %p534_p1 = por %p533_p2, %p532_p13 }
  0x2b   : > { %p535_p4 = pnand %p534_p1, %p528_p8 }
  0x2d   : > { %538 = shalt.err (!%p535_p4)
}
  0x2e   : > { %s539_s5 = scalar_lea.vmem %s756_s18, 768  ;;  %s641_s10 = smov [#allocation5]  }
  0x2f   : > { %p540_p5 = scmp.ne.s32.totalorder %s756_s18, %s539_s5  ;;  %s544_s11 = sshll.u32 %s641_s10, 4  ;;  %s545_s11 = int_to_ptr.vmem [resolvable:$false] %s544_s11 }
  0x30   : > { %s546_s12 = scalar_lea.vmem %s545_s11, 1536  ;;  %p547_p12 = scmp.lt.s32.totalorder %s756_s18, %s545_s11 }
  0x31   : > { %p542_p7 = pnand %p540_p5, %p526_p6  ;;  %p548_p9 = scmp.lt.s32.totalorder %s546_s12, %s539_s5 }
  0x33   : > { %p543_p0 = pneg %p542_p7  ;;  %p549_p10 = por %p548_p9, %p547_p12 }
  0x35   : > { %p550_p13 = pnand %p549_p10, %p543_p0 }
  0x37   : > { %553 = shalt.err (!%p550_p13)
}
  0x38   : > { %s642_s14 = smov 384   ;;  %s643_s15 = smov 24  }
  0x39   : > { %446 = dma.hbm_to_vmem [thread:$0]  (!%p747_p3), %s754_s16, 768, %s756_s18, %s759_s19, %s642_s14, %s642_s14, %s643_s15  }
  0x3a   : > { %p175_p1 = scmp.lt.s32.totalorder %s638_s27, 3  ;;  %p871_p4 = scmp.ge.s32.totalorder %s638_s27, 1 }
  0x3c   : > { %p176_p6 = pnand %p871_p4, %p175_p1 }
  0x3d   : > { %s791_s17 = sand.u32 (!%p176_p6), 1, %s622_s23  }
  0x3e   : > { %179 = sbr.rel (%p176_p6) target bundleno = 273 (0x111), region = 28  ;;  %s182_s21 = scalar_lea.sflag (!%p176_p6), [#allocation6], %s791_s17 }
  0x3f   : > { %s437_s20 = smul.u32 (!%p176_p6), 48, %s791_s17 }
  0x41   : > { %s185_s0 = scalar_lea.vmem (!%p176_p6), [#allocation5], %s437_s20 }
  0x45   : > { %609 = dma.done.wait (%p726_p11), %s182_s21, 768  }
  0x46   : > { %611 = vsyncadd (%p726_p11), %s182_s21, 4294966528  ;;  %p212_p12 = scmp.lt.s32.totalorder %s630_s25, 1  ;;  %v226_v0 = vld [vmem:[%s185_s0] sm:$0xff]  ;;  %v241_v2 = vld [vmem:[%s185_s0 + $0x8] sm:$0xff]  ;;  %s217_s6 = sld [smem:[#allocation4 + %s630_s25]] }
  0x47   : > { %v254_v5 = vld [vmem:[%s185_s0 + $0x10] sm:$0xff]  ;;  %v227_v9 = vld [vmem:[%s185_s0 + $0x18] sm:$0xff]  ;;  %v242_v10 = vld [vmem:[%s185_s0 + $0x20] sm:$0xff]  ;;  %s423_s30 = sshll.u32 %s791_s17, 4  ;;  %s434_s4 = sshll.u32 %s630_s25, 8 }
  0x48   : > { %s213_s13 = scalar_select %p212_p12, %s630_s25, 1  ;;  %v255_v11 = vld [vmem:[%s185_s0 + $0x28] sm:$0xff] }
  0x49   : > { %s209_s5 = scalar_lea.vmem [#allocation8], %s423_s30  ;;  %s810_s14 = scalar_lea.hbm %s864_s3, %s434_s4 }
  0x4a   : > { %s438_s16 = smul.u32 3, %s213_s13  ;;  %s311_s10 = sshll.u32 %s209_s5, 4  ;;  %s812_s10 = int_to_ptr.vmem [resolvable:$true] %s311_s10 }
  0x4b   : > { %s296_s15 = scalar_lea.sflag [#allocation7], %s791_s17  ;;  %s554_s20 = scalar_lea.vmem %s812_s10, 256 }
  0x4c   : > { %s215_s28 = scalar_lea.vmem %s863_s2, %s438_s16  ;;  %v278_v19 = vstv %s217_s6  ;;  %p555_p11 = scmp.ne.s32.totalorder %s812_s10, %s554_s20 }
  0x4d   : > { %v424_v1 = vld [vmem:[%s215_s28] ss:$0 sm:$0xff]  ;;  %v425_v4 = vld [vmem:[%s215_s28 + $0x1] ss:$0 sm:$0xff]  ;;  %v426_v6 = vld [vmem:[%s215_s28 + $0x2] ss:$0 sm:$0xff] }
  0x4e   : > { %v237_v3 = vmul.f32 %v424_v1, %v226_v0  ;;  %v250_v7 = vmul.f32 %v425_v4, %v241_v2  ;;  %v263_v8 = vmul.f32 %v426_v6, %v254_v5  ;;  %v238_v12 = vmul.f32 %v424_v1, %v227_v9  ;;  %p872_p0 = scmp.ne.s32.totalorder %s868_s7, 0  ;;  %s644_s25 = smov [#allocation8]  }
  0x4f   : > { %v251_v13 = vmul.f32 %v425_v4, %v242_v10  ;;  %v264_v15 = vmul.f32 %v426_v6, %v255_v11  ;;  %s558_s21 = sshll.u32 %s644_s25, 4  ;;  %s559_s21 = int_to_ptr.vmem [resolvable:$false] %s558_s21 }
  0x50   : > { %v252_v14 = vadd.f32 %v250_v7, %v237_v3  ;;  %p556_p3 = pnand %p555_p11, %p872_p0  ;;  %s560_s0 = scalar_lea.vmem %s559_s21, 512 }
  0x51   : > { %v253_v16 = vadd.f32 %v251_v13, %v238_v12  ;;  %p561_p2 = scmp.lt.s32.totalorder %s812_s10, %s559_s21  ;;  %p562_p5 = scmp.lt.s32.totalorder %s560_s0, %s554_s20 }
  0x52   : > { %v265_v17 = vadd.f32 %v263_v8, %v252_v14  ;;  %p557_p8 = pneg %p556_p3 }
  0x53   : > { %v266_v18 = vadd.f32 %v264_v15, %v253_v16  ;;  %p563_p7 = por %p562_p5, %p561_p2 }
  0x54   : > { %274 = vadd.xlane.f32.xlu0 %v265_v17 }
  0x55   : > { %p564_p9 = pnand %p563_p7, %p557_p8 }
  0x58   : > { %276 = vadd.xlane.f32.xlu0 %v266_v18 }
  0xe1   : > { %v275_v20 = vpop.xlane.xlu0 %274 }
  0xe2   : > { %v279_v21 = vadd.f32 %v278_v19, %v275_v20 }
  0xe4   : > { %v427_v22 = vmul.f32 -1.442695, %v279_v21 }
  0xe5   : > { %v277_v23 = vpop.xlane.xlu0 %276 }
  0xe6   : > { %506 = vpow2.f32 %v427_v22  ;;  %v280_v24 = vadd.f32 %v278_v19, %v277_v23 }
  0xe8   : > { %v428_v25 = vmul.f32 -1.442695, %v280_v24 }
  0xea   : > { %508 = vpow2.f32 %v428_v25 }
  0xf0   : > { %v507_v26 = vpop.eup %506 }
  0xf1   : > { %v287_v27 = vadd.f32 1.0, %v507_v26 }
  0xf3   : > { %510 = vrcp.f32 %v287_v27 }
  0xf4   : > { %v509_v28 = vpop.eup %508 }
  0xf5   : > { %v288_v29 = vadd.f32 1.0, %v509_v28 }
  0xf7   : > { %512 = vrcp.f32 %v288_v29 }
  0xfd   : > { %v511_v30 = vpop.eup %510 }
  0xfe   : > { %293 = vst [vmem:[%s209_s5] sm:$0xff] %v511_v30 }
 0x101   : > { %v513_v31 = vpop.eup %512 }
 0x102   : > { %294 = vst [vmem:[%s209_s5 + $0x8] sm:$0xff] %v513_v31 }
 0x103   : > { %567 = shalt.err (!%p564_p9)
}
 0x104   : > { %s568_s13 = scalar_lea.hbm %s810_s14, 256  ;;  %s572_s19 = scalar_lea.hbm %s864_s3, 512 }
 0x105   : > { %p569_p10 = scmp.ne.s32.totalorder %s810_s14, %s568_s13  ;;  %p573_p4 = scmp.lt.u32.totalorder %s810_s14, %s864_s3 }
 0x106   : > { %p574_p6 = scmp.lt.u32.totalorder %s572_s19, %s568_s13  ;;  %p576_p11 = scmp.lt.u32.totalorder %s568_s13, %s810_s14 }
 0x107   : > { %p570_p13 = pnand %p569_p10, %p872_p0 }
 0x108   : > { %p575_p12 = por %p574_p6, %p573_p4 }
 0x109   : > { %p571_p1 = pneg %p570_p13 }
 0x10a   : > { %p577_p3 = por %p576_p11, %p575_p12 }
 0x10c   : > { %p578_p8 = pnand %p577_p3, %p571_p1 }
 0x10e   : > { %581 = shalt.err (!%p578_p8)
}
 0x10f   : > { %s645_s30 = smov 128   ;;  %s646_s4 = smov 8  }
 0x110   : > { %441 = dma.vmem_to_hbm [thread:$0]  (%p872_p0), %s812_s10, 256, %s810_s14, %s296_s15, %s645_s30, %s645_s30, %s646_s4  }
 0x111 PF: > { %s326_s5 = sand.u32 1, %s618_s22   ;;  %p873_p2 = scmp.ne.s32.totalorder %s869_s9, 0 }
 0x112   : > { %p874_p5 = scmp.ge.s32.totalorder %s638_s27, 2  ;;  %s327_s11 = scalar_lea.sflag [#allocation7], %s326_s5 }
 0x114   : > { %p448_p7 = pnand %p874_p5, %p873_p2 }
 0x116   : > { %613 = dma.done.wait (!%p448_p7), %s327_s11, 256  }
 0x117   : > { %615 = vsyncadd (!%p448_p7), %s327_s11, 4294967040  ;;  %s23_s27 = sadd.s32 1, %s638_s27   ;;  %s875_s22 = smov %s622_s23 }
 0x118   : > { %p20_p9 = scmp.ge.s32.totalorder %s23_s27, 4   ;;  %s876_s23 = smov %s626_s24 }
 0x119   : > { %s877_s24 = smov %s735_s8  ;;  %s878_s25 = smov %s634_s26 }
 0x11a   : > { %s879_s26 = smov %s881_s29  ;;  %22 = sbr.rel (!%p20_p9) target bundleno = 18 (0x12), region = 85 }
 0x121   :  { %332 = vsyncpa [#allocation6], 1 }
 0x122   :  { %334 = vsyncpa [#allocation6 + $0x1], 1 }
 0x123   :  { %335 = vsyncpa [#allocation7], 1 }
 0x124   :  { %337 = vsyncpa [#allocation7 + $0x1], 1 }

</bundles_post_ra>
